<compile_context>
chip_gen: v7x
topology: tpu7x:2x2x1
jax: 0.10.0
libtpu: 0.0.40
codegen_flags: <defaults>
</compile_context>

<pallas_src>
import jax
import jax.numpy as jnp
from jax.experimental import pallas as pl
from jax.experimental.pallas import tpu as pltpu


def simple_nn_kernel(params_ref, x_ref, y_ref):
    # params_ref: SMEM f32[5] = [w1_0, w1_1, b1, w2, b2]   (resident across all grid steps)
    # x_ref:      VMEM f32[2, TB]   (batch on the lane axis)
    # y_ref:      VMEM f32[1, TB]
    w1_0 = params_ref[0]
    w1_1 = params_ref[1]
    b1 = params_ref[2]
    w2 = params_ref[3]
    b2 = params_ref[4]

    x0 = x_ref[0:1, :]                       # (1, TB)
    x1 = x_ref[1:2, :]                       # (1, TB)

    # hidden = relu(w1_0*x0 + w1_1*x1 + b1)  -- pure VPU FMAs, no MXU
    h = jnp.maximum(w1_0 * x0 + w1_1 * x1 + b1, 0.0)
    # y_hat = sigmoid(w2*h + b2)             -- EUP handles the exp
    y_ref[...] = jax.nn.sigmoid(w2 * h + b2)


def simple_nn_forward(x, w1, b1, w2, b2, *, tb=None):
    """x: (B, 2) f32; w1: (2, 1); b1: (1,) or (1,1); w2: (1,1); b2: (1,) or (1,1).

    Returns (B, 1) f32, matching SimpleNN.forward.
    """
    B = x.shape[0]

    if tb is None:
        # Lane-wide tile: multiple of 128. Large tiles amortize the ~0.35us per-step
        # overhead; 2x-buffered (2,TB)+(1,TB) f32 tiles are tiny (<1 MiB even at 8192),
        # so they fit comfortably under every generation's scoped-VMEM default
        # (v5e 16 MiB / v6e 32 MiB / v7x 32 MiB-of-64 MiB).
        tb = int(min(8192, max(128, pl.next_power_of_2(B))))

    n_tiles = pl.cdiv(B, tb)
    b_pad = n_tiles * tb

    # Pack the 5 scalar parameters for SMEM residency.
    params = jnp.concatenate(
        [
            jnp.ravel(w1).astype(jnp.float32),   # w1_0, w1_1
            jnp.ravel(b1).astype(jnp.float32),   # b1
            jnp.ravel(w2).astype(jnp.float32),   # w2
            jnp.ravel(b2).astype(jnp.float32),   # b2
        ]
    )

    # Layout flip: batch -> lane axis, zero-pad batch up to a tile multiple.
    xt = jnp.zeros((2, b_pad), jnp.float32).at[:, :B].set(x.T.astype(jnp.float32))

    yt = pl.pallas_call(
        simple_nn_kernel,
        out_shape=jax.ShapeDtypeStruct((1, b_pad), jnp.float32),
        grid_spec=pltpu.PrefetchScalarGridSpec(
            num_scalar_prefetch=0,
            grid=(n_tiles,),
            in_specs=[
                # Scalar params: whole (tiny) array in SMEM, shared by every grid step.
                pl.BlockSpec(memory_space=pltpu.MemorySpace.SMEM),
                # Inputs: lane-dense (2, TB) tiles marching along the batch axis.
                pl.BlockSpec((2, tb), lambda i: (0, i)),
            ],
            out_specs=pl.BlockSpec((1, tb), lambda i: (0, i)),
        ),
        compiler_params=pltpu.CompilerParams(
            dimension_semantics=("parallel",),
        ),
    )(params, xt)

    # Back to PyTorch layout (B, 1), dropping batch padding.
    return yt[0, :B].reshape(B, 1)


def init_params(key):
    """Deterministic init mimicking nn.Linear's U(-1/sqrt(fan_in), 1/sqrt(fan_in))."""
    k1, k2, k3, k4 = jax.random.split(key, 4)
    bound1 = 1.0 / jnp.sqrt(2.0)   # hidden: fan_in = 2
    bound2 = 1.0                   # output: fan_in = 1
    w1 = jax.random.uniform(k1, (2, 1), jnp.float32, -bound1, bound1)   # (in, out)
    b1 = jax.random.uniform(k2, (1, 1), jnp.float32, -bound1, bound1)
    w2 = jax.random.uniform(k3, (1, 1), jnp.float32, -bound2, bound2)
    b2 = jax.random.uniform(k4, (1, 1), jnp.float32, -bound2, bound2)
    return w1, b1, w2, b2


if __name__ == "__main__":
    key = jax.random.PRNGKey(0)
    kx, kp = jax.random.split(key)

    B = 8
    x = jax.random.normal(kx, (B, 2), jnp.float32)
    w1, b1, w2, b2 = init_params(kp)

    y = simple_nn_forward(x, w1, b1, w2, b2)
    jax.block_until_ready(y)

    # Pure-JAX reference (elementwise, exact same arithmetic order as the kernel).
    h_ref = jnp.maximum(x[:, 0:1] * w1[0, 0] + x[:, 1:2] * w1[1, 0] + b1[0, 0], 0.0)
    y_ref = jax.nn.sigmoid(h_ref * w2[0, 0] + b2[0, 0])

    assert y.shape == (B, 1)
    assert jnp.allclose(y, y_ref, atol=1e-6), "mismatch vs reference"

    print("KERNEL_OK")
</pallas_src>

<mosaic_0001>
module attributes {stable_mosaic.version = 11 : i64} {
  func.func @simple_nn_kernel(%arg0: i32, %arg1: memref<5xf32, #tpu.memory_space<smem>>, %arg2: memref<2x128xf32, #tpu.memory_space<vmem>>, %arg3: memref<1x128xf32, #tpu.memory_space<vmem>>) attributes {dimension_semantics = [#tpu.dimension_semantics<parallel>], iteration_bounds = array<i64: 1>, scalar_prefetch = 0 : i64, scratch_operands = 0 : i64, tpu.core_type = #tpu.core_type<tc>, window_params = [{transform_indices = @transform_0, window_bounds = array<i64: 5>}, {transform_indices = @transform_1, window_bounds = array<i64: 2, 128>}, {transform_indices = @transform_2, window_bounds = array<i64: 1, 128>}]} {
    %c0 = arith.constant 0 : index
    %0 = memref.load %arg1[%c0] : memref<5xf32, #tpu.memory_space<smem>>
    %c1 = arith.constant 1 : index
    %1 = memref.load %arg1[%c1] : memref<5xf32, #tpu.memory_space<smem>>
    %c2 = arith.constant 2 : index
    %2 = memref.load %arg1[%c2] : memref<5xf32, #tpu.memory_space<smem>>
    %c3 = arith.constant 3 : index
    %3 = memref.load %arg1[%c3] : memref<5xf32, #tpu.memory_space<smem>>
    %c4 = arith.constant 4 : index
    %4 = memref.load %arg1[%c4] : memref<5xf32, #tpu.memory_space<smem>>
    %c0_0 = arith.constant 0 : index
    %c0_1 = arith.constant 0 : index
    %5 = vector.load %arg2[%c0_0, %c0_1] : memref<2x128xf32, #tpu.memory_space<vmem>>, vector<1x128xf32>
    %c1_2 = arith.constant 1 : index
    %c0_3 = arith.constant 0 : index
    %6 = vector.load %arg2[%c1_2, %c0_3] : memref<2x128xf32, #tpu.memory_space<vmem>>, vector<1x128xf32>
    %7 = vector.broadcast %0 : f32 to vector<1x128xf32>
    %8 = arith.mulf %7, %5 : vector<1x128xf32>
    %9 = vector.broadcast %1 : f32 to vector<1x128xf32>
    %10 = arith.mulf %9, %6 : vector<1x128xf32>
    %11 = arith.addf %8, %10 : vector<1x128xf32>
    %12 = vector.broadcast %2 : f32 to vector<1x128xf32>
    %13 = arith.addf %11, %12 : vector<1x128xf32>
    %cst = arith.constant 0.000000e+00 : f32
    %14 = vector.broadcast %cst : f32 to vector<1x128xf32>
    %15 = arith.maximumf %13, %14 : vector<1x128xf32>
    %16 = vector.broadcast %3 : f32 to vector<1x128xf32>
    %17 = arith.mulf %16, %15 : vector<1x128xf32>
    %18 = vector.broadcast %4 : f32 to vector<1x128xf32>
    %19 = arith.addf %17, %18 : vector<1x128xf32>
    %20 = arith.negf %19 : vector<1x128xf32>
    %21 = math.exp %20 : vector<1x128xf32>
    %cst_4 = arith.constant 1.000000e+00 : f32
    %22 = vector.broadcast %cst_4 : f32 to vector<1x128xf32>
    %23 = arith.addf %22, %21 : vector<1x128xf32>
    %24 = arith.divf %22, %23 : vector<1x128xf32>
    %c0_5 = arith.constant 0 : index
    %c0_6 = arith.constant 0 : index
    %25 = vector.load %arg3[%c0_5, %c0_6] : memref<1x128xf32, #tpu.memory_space<vmem>>, vector<1x128xf32>
    tpu.vector_store %arg3[%c0_5, %c0_6], %24 {strides = array<i32>} : memref<1x128xf32, #tpu.memory_space<vmem>>, vector<1x128xf32>,
    return
  }
  func.func @transform_0(%arg0: i32) -> i32 {
    %c0_i32 = arith.constant 0 : i32
    %c0_i32_0 = arith.constant 0 : i32
    return %c0_i32 : i32
  }
  func.func @transform_1(%arg0: i32) -> (i32, i32) {
    %c0_i32 = arith.constant 0 : i32
    %c0_i32_0 = arith.constant 0 : i32
    return %c0_i32, %arg0 : i32, i32
  }
  func.func @transform_2(%arg0: i32) -> (i32, i32) {
    %c0_i32 = arith.constant 0 : i32
    %c0_i32_0 = arith.constant 0 : i32
    return %c0_i32, %arg0 : i32, i32
  }
}

</mosaic_0001>

<bundles_post_ra>
// kernel: tpu_custom_call.1
= control target key start
LH: loop header
LB: loop body
LE: loop exit
PB: predicated region body
PF: predicated region fallthrough
CT: control target
= control target key end

     0   :  { %7 = vsyncpa [#allocation4], 0  ;;  %s158_s0 = inlined_call_operand.hbm [shape: f32[5], index: 0, kind: input, shape index: {}]   ;;  %s159_s1 = inlined_call_operand.vmem [shape: f32[2,128], index: 1, kind: input, shape index: {}]   ;;  %s160_s2 = inlined_call_operand.hbm [shape: f32[1,128], index: 2, kind: output, shape index: {}]  }
   0x1   :  { %8 = vsyncpa [#allocation3], 0  ;;  %s75_s11 = scalar_lea.hbm %s158_s0, 16 }
   0x2   :  { %p76_p0 = scmp.ne.s32.totalorder %s158_s0, %s75_s11  ;;  %p79_p1 = scmp.lt.u32.totalorder %s75_s11, %s158_s0 }
   0x4   :  { %p81_p2 = pnand %p79_p1, %p76_p0 }
   0x6   :  { %84 = shalt.err (!%p81_p2)
}
   0x7   :  { %s111_s16 = smov [#allocation2]  }
   0x8   :  { %16 = dma.hbm_to_smem %s158_s0, 16, %s111_s16, [#allocation4]  }
   0x9   :  { %107 = dma.done.wait [#allocation4], 16  }
   0xa   :  { %108 = vsyncadd [#allocation4], 4294967280 }
   0xb   :  { %22 = sfence }
   0xc   :  { %s23_s19 = sld [smem:[#allocation2]]  ;;  %s64_s20 = sld [smem:[#allocation2 + $0x1]]  ;;  %v28_v0 = vld [vmem:[%s159_s1] sm:$0x1]  ;;  %v29_v1 = vld [vmem:[%s159_s1 + $0x1] sm:$0x1] }
   0xd   :  { %s65_s21 = sld [smem:[#allocation2 + $0x2]]  ;;  %s66_s22 = sld [smem:[#allocation2 + $0x3]] }
   0xe   :  { %s67_s27 = sld [smem:[#allocation2 + $0x4]]  ;;  %s112_s0 = smov [#allocation5]  }
   0xf   :  { %s55_s1 = sshll.u32 %s112_s0, 4  ;;  %s56_s1 = int_to_ptr.vmem [resolvable:$true] %s55_s1 }
  0x10   :  { %s85_s28 = scalar_lea.vmem %s56_s1, 16  ;;  %s89_s29 = scalar_lea.vmem %s56_s1, 32 }
  0x11   :  { %p86_p3 = scmp.ne.s32.totalorder %s56_s1, %s85_s28  ;;  %p90_p4 = scmp.lt.s32.totalorder %s56_s1, %s56_s1 }
  0x12   :  { %v30_v2 = vstv %s23_s19  ;;  %v32_v3 = vstv %s64_s20  ;;  %p91_p5 = scmp.lt.s32.totalorder %s89_s29, %s85_s28 }
  0x13   :  { %v31_v4 = vmul.f32 %v30_v2, %v28_v0  ;;  %v33_v5 = vmul.f32 %v32_v3, %v29_v1  ;;  %v35_v6 = vstv %s65_s21  ;;  %v38_v9 = vstv %s66_s22 }
  0x14   :  { %v40_v11 = vstv %s67_s27  ;;  %p92_p6 = por %p91_p5, %p90_p4 }
  0x15   :  { %v34_v7 = vadd.f32 %v33_v5, %v31_v4 }
  0x16   :  { %p93_p7 = pnand %p92_p6, %p86_p3 }
  0x17   :  { %v36_v8 = vadd.f32 %v35_v6, %v34_v7 }
  0x19   :  { %v37_v10 = vmax.f32 %v36_v8, 0.0 }
  0x1b   :  { %v39_v12 = vmul.f32 %v38_v9, %v37_v10 }
  0x1d   :  { %v41_v13 = vadd.f32 %v40_v11, %v39_v12 }
  0x1f   :  { %v68_v14 = vmul.f32 -1.442695, %v41_v13 }
  0x21   :  { %71 = vpow2.f32 %v68_v14 }
  0x2b   :  { %v72_v15 = vpop.eup %71 }
  0x2c   :  { %v45_v16 = vadd.f32 1.0, %v72_v15 }
  0x2e   :  { %73 = vrcp.f32 %v45_v16 }
  0x38   :  { %v74_v17 = vpop.eup %73 }
  0x39   :  { %48 = vst [vmem:[#allocation5] sm:$0x1] %v74_v17 }
  0x3a   :  { %96 = shalt.err (!%p93_p7)
}
  0x3b   :  { %s97_s4 = scalar_lea.hbm %s160_s2, 16 }
  0x3c   :  { %p98_p8 = scmp.ne.s32.totalorder %s160_s2, %s97_s4  ;;  %p101_p9 = scmp.lt.u32.totalorder %s97_s4, %s160_s2 }
  0x3e   :  { %p103_p10 = pnand %p101_p9, %p98_p8 }
  0x40   :  { %106 = shalt.err (!%p103_p10)
}
  0x41   :  { %58 = dma.vmem_to_hbm [thread:$0]  %s56_s1, 16, %s160_s2, [#allocation3]  }
  0x42   :  { %109 = dma.done.wait [#allocation3], 16  }
  0x43   :  { %110 = vsyncadd [#allocation3], 4294967280 }
  0x44   :  { %62 = vsyncpa [#allocation3], 1 }
  0x45   :  { %63 = vsyncpa [#allocation4], 1 }

</bundles_post_ra>
